<compile_context>
chip_gen: v5e
topology: v5e:2x2
jax: 0.10.0
libtpu: 0.0.40
codegen_flags: <defaults>
</compile_context>

<pallas_src>
import jax
import jax.numpy as jnp
from jax.experimental import pallas as pl
from jax.experimental.pallas import tpu as pltpu


def _pred_layer_kernel(inf_ref, wT_ref, next_ref, state_ref, out_ref):
    inf_rate = inf_ref[0, 0]                        # scalar from SMEM

    # matvec on the MXU: (1, O) @ (O, L) -> (1, L), f32 accumulate.
    wn = jnp.dot(next_ref[...], wT_ref[...],
                 preferred_element_type=jnp.float32)

    # Static sublane slices of the fused (3, L) state slab (views, no copies).
    bu_errors = state_ref[0:1, :]                   # (1, L)
    r_act_in  = state_ref[1:2, :]                   # (1, L)
    r_out_in  = state_ref[2:3, :]                   # (1, L)

    e_act = r_out_in - wn                           # (1, L)
    r_act = r_act_in + inf_rate * (bu_errors - e_act)
    r_out = jnp.maximum(r_act, 0.0)                 # act_func = ReLU

    # Single fused lane-dense writeback: rows = [e_act, r_act, r_out].
    out_ref[...] = jnp.concatenate([e_act, r_act, r_out], axis=0)


def pred_layer_forward(weights, bu_errors, r_act, r_out, nextlayer_r_out,
                       inf_rate):
    """weights: (L, O); bu_errors/r_act/r_out: (L,); nextlayer_r_out: (O,)."""
    L, O = weights.shape

    # Lane-dense layouts: transpose W once in the wrapper, vectors as rows,
    # and pack the three L-sized state vectors into one (3, L) slab.
    wT = weights.T.astype(jnp.float32)                       # (O, L)
    nx = nextlayer_r_out.reshape(1, O).astype(jnp.float32)   # (1, O)
    state = jnp.stack(
        [bu_errors, r_act, r_out], axis=0).astype(jnp.float32)  # (3, L)
    inf = jnp.asarray(inf_rate, dtype=jnp.float32).reshape(1, 1)

    vmem = pl.BlockSpec(memory_space=pltpu.MemorySpace.VMEM)
    smem = pl.BlockSpec(memory_space=pltpu.MemorySpace.SMEM)

    out = pl.pallas_call(
        _pred_layer_kernel,
        out_shape=jax.ShapeDtypeStruct((3, L), jnp.float32),
        in_specs=[smem, vmem, vmem, vmem],
        out_specs=vmem,
    )(inf, wT, nx, state)

    # Back to 1-D vectors, matching the torch module's return shapes.
    return out[0], out[1], out[2]


def init_weights(key, layer_size, out_size):
    # nn.init.normal_(w, 0, 0.5); clamp(min=0); / layer_size  (deterministic)
    w = 0.5 * jax.random.normal(key, (layer_size, out_size), dtype=jnp.float32)
    w = jnp.maximum(w, 0.0)
    return w / layer_size


if __name__ == "__main__":
    layer_size = 32
    out_size = 16
    inf_rate = 0.1

    key = jax.random.PRNGKey(0)
    kw, k1, k2, k3 = jax.random.split(key, 4)

    weights = init_weights(kw, layer_size, out_size)
    bu_errors = jax.random.normal(k1, (layer_size,), dtype=jnp.float32)
    r_act = jax.random.normal(k2, (layer_size,), dtype=jnp.float32)
    r_out = jnp.maximum(r_act, 0.0)  # consistent with act_func = ReLU
    nextlayer_r_out = jnp.maximum(
        jax.random.normal(k3, (out_size,), dtype=jnp.float32), 0.0)

    e_act, r_act_new, r_out_new = pred_layer_forward(
        weights, bu_errors, r_act, r_out, nextlayer_r_out, inf_rate)
    jax.block_until_ready((e_act, r_act_new, r_out_new))

    # Pure-JAX reference check of the forward semantics.
    e_ref = r_out - weights @ nextlayer_r_out
    ra_ref = r_act + inf_rate * (bu_errors - e_ref)
    ro_ref = jnp.maximum(ra_ref, 0.0)
    assert jnp.allclose(e_act, e_ref, atol=1e-5)
    assert jnp.allclose(r_act_new, ra_ref, atol=1e-5)
    assert jnp.allclose(r_out_new, ro_ref, atol=1e-5)

    print("KERNEL_OK")
</pallas_src>

<mosaic_0001>
module attributes {stable_mosaic.version = 11 : i64} {
  func.func @_pred_layer_kernel(%arg0: memref<1x1xf32, #tpu.memory_space<smem>>, %arg1: memref<16x32xf32, #tpu.memory_space<vmem>>, %arg2: memref<1x16xf32, #tpu.memory_space<vmem>>, %arg3: memref<3x32xf32, #tpu.memory_space<vmem>>, %arg4: memref<3x32xf32, #tpu.memory_space<vmem>>) attributes {dimension_semantics = [], scalar_prefetch = 0 : i64, scratch_operands = 0 : i64, tpu.core_type = #tpu.core_type<tc>} {
    %c0 = arith.constant 0 : index
    %c0_0 = arith.constant 0 : index
    %0 = memref.load %arg0[%c0, %c0_0] : memref<1x1xf32, #tpu.memory_space<smem>>
    %c0_1 = arith.constant 0 : index
    %c0_2 = arith.constant 0 : index
    %1 = vector.load %arg2[%c0_1, %c0_2] : memref<1x16xf32, #tpu.memory_space<vmem>>, vector<1x16xf32>
    %c0_3 = arith.constant 0 : index
    %c0_4 = arith.constant 0 : index
    %2 = vector.load %arg1[%c0_3, %c0_4] : memref<16x32xf32, #tpu.memory_space<vmem>>, vector<16x32xf32>
    %cst = arith.constant dense<0.000000e+00> : vector<1x32xf32>
    %3 = tpu.matmul %1, %2, %cst {dimension_numbers = #tpu.dot_dimension_numbers<[1], [0], [0], [1], [0, 0, 1, 1], [], []>} : vector<1x16xf32>, vector<16x32xf32>, vector<1x32xf32> -> vector<1x32xf32>
    %c0_5 = arith.constant 0 : index
    %c0_6 = arith.constant 0 : index
    %4 = vector.load %arg3[%c0_5, %c0_6] : memref<3x32xf32, #tpu.memory_space<vmem>>, vector<1x32xf32>
    %c1 = arith.constant 1 : index
    %c0_7 = arith.constant 0 : index
    %5 = vector.load %arg3[%c1, %c0_7] : memref<3x32xf32, #tpu.memory_space<vmem>>, vector<1x32xf32>
    %c2 = arith.constant 2 : index
    %c0_8 = arith.constant 0 : index
    %6 = vector.load %arg3[%c2, %c0_8] : memref<3x32xf32, #tpu.memory_space<vmem>>, vector<1x32xf32>
    %7 = arith.subf %6, %3 : vector<1x32xf32>
    %8 = arith.subf %4, %7 : vector<1x32xf32>
    %9 = vector.broadcast %0 : f32 to vector<1x32xf32>
    %10 = arith.mulf %9, %8 : vector<1x32xf32>
    %11 = arith.addf %5, %10 : vector<1x32xf32>
    %cst_9 = arith.constant 0.000000e+00 : f32
    %12 = vector.broadcast %cst_9 : f32 to vector<1x32xf32>
    %13 = arith.maximumf %11, %12 : vector<1x32xf32>
    %14 = tpu.concatenate %7, %11, %13 in 0 : vector<1x32xf32>, vector<1x32xf32>, vector<1x32xf32> -> vector<3x32xf32>
    %c0_10 = arith.constant 0 : index
    %c0_11 = arith.constant 0 : index
    %15 = vector.load %arg4[%c0_10, %c0_11] : memref<3x32xf32, #tpu.memory_space<vmem>>, vector<3x32xf32>
    tpu.vector_store %arg4[%c0_10, %c0_11], %14 {strides = array<i32>} : memref<3x32xf32, #tpu.memory_space<vmem>>, vector<3x32xf32>,
    return
  }
}

</mosaic_0001>

<bundles_post_ra>
// kernel: tpu_custom_call.1
= control target key start
LH: loop header
LB: loop body
LE: loop exit
PB: predicated region body
PF: predicated region fallthrough
CT: control target
= control target key end

     0   :  { %10 = vsyncpa [#allocation4], 0  ;;  %s245_s0 = inlined_call_operand.<no memory space> [shape: f32[1,1], index: 0, kind: input, shape index: {}]   ;;  %s246_s1 = inlined_call_operand.hbm [shape: f32[16,32], index: 1, kind: input, shape index: {}]   ;;  %s247_s2 = inlined_call_operand.vmem [shape: f32[1,16], index: 2, kind: input, shape index: {}]   ;;  %s248_s3 = inlined_call_operand.hbm [shape: f32[3,32], index: 3, kind: input, shape index: {}]   ;;  %s249_s4 = inlined_call_operand.hbm [shape: f32[3,32], index: 4, kind: output, shape index: {}]  }
   0x1   :  { %11 = vsyncpa [#allocation7], 0 }
   0x2   :  { %12 = vsyncpa [#allocation5], 0  ;;  %s19_s17 = sshll.u32 %s246_s1, 4  ;;  %s200_s18 = smov [#allocation3]   ;;  %s20_s17 = int_to_ptr.hbm [resolvable:$true] %s19_s17 }
   0x3   :  { %s21_s19 = sshll.u32 %s200_s18, 4  ;;  %s35_s22 = sshll.u32 %s248_s3, 4  ;;  %s22_s19 = int_to_ptr.vmem [resolvable:$true] %s21_s19  ;;  %s36_s22 = int_to_ptr.hbm [resolvable:$true] %s35_s22 }
   0x4   :  { %s201_s23 = smov 128   ;;  %s202_s24 = smov 8  }
   0x5   :  { %27 = dma.hbm_to_vmem [thread:$0]  %s20_s17, 256, %s22_s19, [#allocation4], %s201_s23, %s201_s23, %s202_s24  }
   0x6   :  { %s203_s25 = smov [#allocation6]  }
   0x7   :  { %s37_s26 = sshll.u32 %s203_s25, 4  ;;  %s38_s26 = int_to_ptr.vmem [resolvable:$true] %s37_s26 }
   0x8   :  { %40 = dma.hbm_to_vmem [thread:$0]  %s36_s22, 64, %s38_s26, [#allocation7]  }
   0x9   :  { %194 = dma.done.wait [#allocation4], 256  }
   0xa   :  { %195 = vsyncadd [#allocation4], 4294967040 }
   0xb   :  { %196 = dma.done.wait [#allocation7], 64  }
   0xc   :  { %197 = vsyncadd [#allocation7], 4294967232  ;;  %v52_v0 = vld [vmem:[#allocation3 + $0x8] sm:$0xff]  ;;  %v51_v1 = vld [vmem:[#allocation3] sm:$0xff]  ;;  %vm53_vm0 = vcmask 130048   ;;  %v82_v7 = vstv %s245_s0  ;;  %vm92_vm1 = vcmask 1040384  }
   0xd   :  { %71 = vmatpush.msra.mxu0 %v52_v0  ;;  %v50_v2 = vld [vmem:[%s247_s2] sm:$0x1]  ;;  %v79_v3 = vld [vmem:[#allocation6 + $0x2] sm:$0x1]  ;;  %v77_v5 = vld [vmem:[#allocation6] sm:$0x1] }
   0xe   :  { %v78_v9 = vld [vmem:[#allocation6 + $0x1] sm:$0x1]  ;;  %s204_s29 = smov [#allocation8]   ;;  %s105_s6 = sshll.u32 %s249_s4, 4  ;;  %vm94_vm2 = vcmask 1041408   ;;  %vm96_vm3 = vcmask 256000   ;;  %s106_s6 = int_to_ptr.hbm [resolvable:$true] %s105_s6 }
   0xf   :  { %72 = vmatpush.msra.mxu0 %v51_v1  ;;  %s103_s2 = sshll.u32 %s204_s29, 4  ;;  %s104_s2 = int_to_ptr.vmem [resolvable:$true] %s103_s2 }
  0x10   :  { %116 = vmatmul.msk.f32.vlgmr.msra.gmra.mxu0 %vm53_vm0, %v50_v2 }
  0x8d   :  { %v74_v4 = vpop.f32.mrf.mxu0 }
  0x8e   :  { %v80_v6 = vsub.f32 %v79_v3, %v74_v4 }
  0x90   :  { %v81_v8 = vsub.f32 %v77_v5, %v80_v6 }
  0x92   :  { %v83_v10 = vmul.f32 %v82_v7, %v81_v8 }
  0x94   :  { %v84_v11 = vadd.f32 %v83_v10, %v78_v9 }
  0x96   :  { %v85_v12 = vmax.f32 %v84_v11, 0.0  ;;  %v87_v13 = vrot.slane %v84_v11, 7 }
  0x98   :  { %v90_v14 = vrot.slane %v85_v12, 6  ;;  %v93_v15 = vsel %vm92_vm1, %v80_v6, %v87_v13 }
  0x9a   :  { %v95_v16 = vsel %vm94_vm2, %v93_v15, %v90_v14 }
  0x9b   :  { %97 = vst.msk [vmem:[#allocation8] sm:$0x7] %vm96_vm3, %v95_v16 }
  0x9c   :  { %108 = dma.vmem_to_hbm [thread:$0]  %s104_s2, 64, %s106_s6, [#allocation5]  }
  0x9d   :  { %198 = dma.done.wait [#allocation5], 64  }
  0x9e   :  { %199 = vsyncadd [#allocation5], 4294967232 }
  0x9f   :  { %113 = vsyncpa [#allocation4], 1 }
  0xa0   :  { %114 = vsyncpa [#allocation7], 1 }
  0xa1   :  { %115 = vsyncpa [#allocation5], 1 }

</bundles_post_ra>
